<compile_context>
chip_gen: v6e
topology: v6e:2x2x1
jax: 0.10.0
libtpu: 0.0.40
codegen_flags: <defaults>
</compile_context>

<pallas_src>
import functools

import jax
import jax.numpy as jnp
from jax.experimental import pallas as pl
from jax.experimental.pallas import tpu as pltpu


def _nearest_gather(x_rows, gx, gy, *, h_in, w_in):
    """Gather x_rows (R, H_in*W_in) at nearest pixel of normalized coords gx/gy (1, P).

    align_corners=True unnormalization, padding_mode='border' clamp,
    mode='nearest' round-half-to-even (matches torch's std::nearbyint).
    Returns (R, P) float32.
    """
    if x_rows.dtype != jnp.float32:          # static check; no-op for f32 inputs
        x_rows = x_rows.astype(jnp.float32)

    ix = jnp.round(jnp.clip((gx + 1.0) * 0.5 * (w_in - 1), 0.0, w_in - 1)).astype(jnp.int32)
    iy = jnp.round(jnp.clip((gy + 1.0) * 0.5 * (h_in - 1), 0.0, h_in - 1)).astype(jnp.int32)
    flat = iy * w_in + ix                                        # (1, P)

    # One-hot gather matrix via broadcast compare: ohT[q, p] = 1 iff flat[p] == q.
    # (HW_in, 1) iota broadcast against (1, P) -- no full-size int32 iota materialized.
    q = jax.lax.broadcasted_iota(jnp.int32, (h_in * w_in, 1), 0)
    ohT = (q == flat).astype(jnp.float32)                        # (HW_in, P)

    # Gather expressed as an MXU matmul (exact: one-hot entries are 0/1, f32 accumulate).
    return jnp.dot(x_rows, ohT, preferred_element_type=jnp.float32)


def _warp_kernel_collapsed(x_ref, g_ref, out_ref, *, n, c, h_in, w_in):
    # x_ref:   (N*C, H_in*W_in)   g_ref: (N, 2, P)   out_ref: (N*C, P)
    for b in range(n):                                   # static unroll; N is tiny
        gb = g_ref[b]                                    # (2, P)
        rows = _nearest_gather(x_ref[pl.ds(b * c, c), :],
                               gb[0:1, :], gb[1:2, :], h_in=h_in, w_in=w_in)
        out_ref[pl.ds(b * c, c), :] = rows.astype(out_ref.dtype)


def _warp_kernel_per_batch(x_ref, g_ref, out_ref, *, h_in, w_in):
    # x_ref: (1, C, H_in*W_in)   g_ref: (1, 2, P)   out_ref: (1, C, P)
    g = g_ref[0]                                         # (2, P)
    rows = _nearest_gather(x_ref[0], g[0:1, :], g[1:2, :], h_in=h_in, w_in=w_in)
    out_ref[0] = rows.astype(out_ref.dtype)


def _prefer_batch_parallel():
    """True on chips with >1 TensorCore (v7x) where a parallel batch grid pays off."""
    try:
        kind = jax.devices()[0].device_kind.lower()
    except Exception:
        return False
    return ("v7" in kind) or ("7x" in kind)


def spatial_transform_nearest(x, flow, sample_grid, *, batch_parallel=None):
    """Pallas equivalent of SpatialTransformNearest_unit.forward.

    x:           (N, C, H_in, W_in) float32
    flow:        (N, 2, H, W)       float32
    sample_grid: (N, W, H, 2)       float32 normalized coords
    returns:     (N, C, W, H)       same dtype as x
    """
    n, c, h_in, w_in = x.shape
    flow_sw = jnp.swapaxes(flow, 1, 3)                           # (N, W, H, 2) -- glue
    wo, ho = flow_sw.shape[1], flow_sw.shape[2]
    p = wo * ho

    # One fused XLA elementwise op; lane-dense (N, 2, P) layout for the kernel.
    g = (sample_grid + flow_sw).astype(jnp.float32)              # (N, W, H, 2)
    g = jnp.moveaxis(g, -1, 1).reshape(n, 2, p)                  # (N, 2, W*H)

    if batch_parallel is None:
        batch_parallel = _prefer_batch_parallel()

    if batch_parallel and n > 1:
        # v7x: shard the batch axis across the two TensorCores.
        kernel = functools.partial(_warp_kernel_per_batch, h_in=h_in, w_in=w_in)
        out = pl.pallas_call(
            kernel,
            out_shape=jax.ShapeDtypeStruct((n, c, p), x.dtype),
            grid_spec=pltpu.PrefetchScalarGridSpec(
                num_scalar_prefetch=0,
                grid=(n,),
                in_specs=[
                    pl.BlockSpec((1, c, h_in * w_in), lambda i: (i, 0, 0)),
                    pl.BlockSpec((1, 2, p), lambda i: (i, 0, 0)),
                ],
                out_specs=pl.BlockSpec((1, c, p), lambda i: (i, 0, 0)),
            ),
            compiler_params=pltpu.CompilerParams(
                dimension_semantics=("parallel",)),
        )(x.reshape(n, c, h_in * w_in), g)
        return out.reshape(n, c, wo, ho)

    # v5e / v6e: single TensorCore -> one invocation, (N*C, P) = (8, 256) dense slab.
    kernel = functools.partial(_warp_kernel_collapsed, n=n, c=c, h_in=h_in, w_in=w_in)
    out = pl.pallas_call(
        kernel,
        out_shape=jax.ShapeDtypeStruct((n * c, p), x.dtype),
        grid_spec=pltpu.PrefetchScalarGridSpec(
            num_scalar_prefetch=0,
            grid=(1,),
            in_specs=[
                pl.BlockSpec((n * c, h_in * w_in), lambda i: (0, 0)),
                pl.BlockSpec((n, 2, p), lambda i: (0, 0, 0)),
            ],
            out_specs=pl.BlockSpec((n * c, p), lambda i: (0, 0)),
        ),
        compiler_params=pltpu.CompilerParams(
            dimension_semantics=("arbitrary",)),
    )(x.reshape(n * c, h_in * w_in), g)
    return out.reshape(n, c, wo, ho)


def _reference(x, flow, sample_grid):
    """Pure-JAX reference of grid_sample(mode='nearest', border, align_corners=True)."""
    n, c, h_in, w_in = x.shape
    g = (sample_grid + jnp.swapaxes(flow, 1, 3)).astype(jnp.float32)
    gx, gy = g[..., 0], g[..., 1]
    ix = jnp.round(jnp.clip((gx + 1.0) * 0.5 * (w_in - 1), 0.0, w_in - 1)).astype(jnp.int32)
    iy = jnp.round(jnp.clip((gy + 1.0) * 0.5 * (h_in - 1), 0.0, h_in - 1)).astype(jnp.int32)
    bi = jnp.arange(n)[:, None, None, None]
    ci = jnp.arange(c)[None, :, None, None]
    return x[bi, ci, iy[:, None, :, :], ix[:, None, :, :]]


if __name__ == "__main__":
    key = jax.random.PRNGKey(0)
    k1, k2, k3 = jax.random.split(key, 3)

    N, C, H, W = 2, 4, 16, 16
    x = jax.random.normal(k1, (N, C, H, W), dtype=jnp.float32)
    flow = 0.2 * jax.random.normal(k2, (N, 2, H, W), dtype=jnp.float32)
    sample_grid = jax.random.uniform(k3, (N, W, H, 2), dtype=jnp.float32,
                                     minval=-1.0, maxval=1.0)

    ref = _reference(x, flow, sample_grid)

    # Auto-selected path for this chip.
    out = jax.block_until_ready(spatial_transform_nearest(x, flow, sample_grid))
    assert out.shape == (N, C, W, H), out.shape
    assert jnp.allclose(out, ref, atol=1e-6), "mismatch vs reference (auto path)"

    # Exercise both code paths explicitly (both are valid on any TPU generation).
    out_c = jax.block_until_ready(
        spatial_transform_nearest(x, flow, sample_grid, batch_parallel=False))
    out_p = jax.block_until_ready(
        spatial_transform_nearest(x, flow, sample_grid, batch_parallel=True))
    assert jnp.allclose(out_c, ref, atol=1e-6), "mismatch vs reference (collapsed path)"
    assert jnp.allclose(out_p, ref, atol=1e-6), "mismatch vs reference (batch-parallel path)"

    print("KERNEL_OK")
</pallas_src>

<mosaic_0001>
module attributes {stable_mosaic.version = 11 : i64} {
  func.func @_warp_kernel_collapsed(%arg0: i32, %arg1: memref<8x256xf32, #tpu.memory_space<vmem>>, %arg2: memref<2x2x256xf32, #tpu.memory_space<vmem>>, %arg3: memref<8x256xf32, #tpu.memory_space<vmem>>) attributes {dimension_semantics = [#tpu.dimension_semantics<arbitrary>], iteration_bounds = array<i64: 1>, scalar_prefetch = 0 : i64, scratch_operands = 0 : i64, tpu.core_type = #tpu.core_type<tc>, window_params = [{pipeline_mode = #tpu.pipeline_mode<synchronous>, transform_indices = @transform_0, window_bounds = array<i64: 8, 256>}, {pipeline_mode = #tpu.pipeline_mode<synchronous>, transform_indices = @transform_1, window_bounds = array<i64: 2, 2, 256>}, {pipeline_mode = #tpu.pipeline_mode<synchronous>, transform_indices = @transform_2, window_bounds = array<i64: 8, 256>}]} {
    %c0 = arith.constant 0 : index
    %c0_0 = arith.constant 0 : index
    %c0_1 = arith.constant 0 : index
    %0 = vector.load %arg2[%c0, %c0_0, %c0_1] : memref<2x2x256xf32, #tpu.memory_space<vmem>>, vector<1x2x256xf32>
    %1 = vector.shape_cast %0 : vector<1x2x256xf32> to vector<2x256xf32>
    %c0_2 = arith.constant 0 : index
    %c0_3 = arith.constant 0 : index
    %2 = vector.load %arg1[%c0_2, %c0_3] : memref<8x256xf32, #tpu.memory_space<vmem>>, vector<4x256xf32>
    %3 = vector.extract_strided_slice %1 {offsets = [0, 0], sizes = [1, 256], strides = [1, 1]} : vector<2x256xf32> to vector<1x256xf32>
    %4 = vector.extract_strided_slice %1 {offsets = [1, 0], sizes = [1, 256], strides = [1, 1]} : vector<2x256xf32> to vector<1x256xf32>
    %cst = arith.constant 1.000000e+00 : f32
    %5 = vector.broadcast %cst : f32 to vector<1x256xf32>
    %6 = arith.addf %3, %5 : vector<1x256xf32>
    %cst_4 = arith.constant 5.000000e-01 : f32
    %7 = vector.broadcast %cst_4 : f32 to vector<1x256xf32>
    %8 = arith.mulf %6, %7 : vector<1x256xf32>
    %cst_5 = arith.constant 1.500000e+01 : f32
    %9 = vector.broadcast %cst_5 : f32 to vector<1x256xf32>
    %10 = arith.mulf %8, %9 : vector<1x256xf32>
    %cst_6 = arith.constant 0.000000e+00 : f32
    %c15_i32 = arith.constant 15 : i32
    %11 = vector.broadcast %cst_6 : f32 to vector<1x256xf32>
    %12 = arith.maximumf %11, %10 : vector<1x256xf32>
    %13 = arith.sitofp %c15_i32 : i32 to f32
    %14 = vector.broadcast %13 : f32 to vector<1x256xf32>
    %15 = arith.minimumf %14, %12 : vector<1x256xf32>
    %16 = math.roundeven %15 : vector<1x256xf32>
    %17 = arith.fptosi %16 : vector<1x256xf32> to vector<1x256xi32>
    %cst_7 = arith.constant 1.000000e+00 : f32
    %18 = vector.broadcast %cst_7 : f32 to vector<1x256xf32>
    %19 = arith.addf %4, %18 : vector<1x256xf32>
    %cst_8 = arith.constant 5.000000e-01 : f32
    %20 = vector.broadcast %cst_8 : f32 to vector<1x256xf32>
    %21 = arith.mulf %19, %20 : vector<1x256xf32>
    %cst_9 = arith.constant 1.500000e+01 : f32
    %22 = vector.broadcast %cst_9 : f32 to vector<1x256xf32>
    %23 = arith.mulf %21, %22 : vector<1x256xf32>
    %cst_10 = arith.constant 0.000000e+00 : f32
    %c15_i32_11 = arith.constant 15 : i32
    %24 = vector.broadcast %cst_10 : f32 to vector<1x256xf32>
    %25 = arith.maximumf %24, %23 : vector<1x256xf32>
    %26 = arith.sitofp %c15_i32_11 : i32 to f32
    %27 = vector.broadcast %26 : f32 to vector<1x256xf32>
    %28 = arith.minimumf %27, %25 : vector<1x256xf32>
    %29 = math.roundeven %28 : vector<1x256xf32>
    %30 = arith.fptosi %29 : vector<1x256xf32> to vector<1x256xi32>
    %c16_i32 = arith.constant 16 : i32
    %31 = vector.broadcast %c16_i32 : i32 to vector<1x256xi32>
    %32 = arith.muli %30, %31 : vector<1x256xi32>
    %33 = arith.addi %32, %17 : vector<1x256xi32>
    %34 = tpu.iota {dimensions = array<i32: 0>} : vector<256x1xi32>
    %35 = vector.broadcast %34 : vector<256x1xi32> to vector<256x256xi32>
    %36 = vector.broadcast %33 : vector<1x256xi32> to vector<256x256xi32>
    %37 = arith.cmpi eq, %35, %36 : vector<256x256xi32>
    %38 = arith.extui %37 : vector<256x256xi1> to vector<256x256xi32>
    %39 = arith.sitofp %38 : vector<256x256xi32> to vector<256x256xf32>
    %cst_12 = arith.constant dense<0.000000e+00> : vector<4x256xf32>
    %40 = tpu.matmul %2, %39, %cst_12 {dimension_numbers = #tpu.dot_dimension_numbers<[1], [0], [0], [1], [0, 0, 1, 1], [], []>} : vector<4x256xf32>, vector<256x256xf32>, vector<4x256xf32> -> vector<4x256xf32>
    %c0_13 = arith.constant 0 : index
    %c0_14 = arith.constant 0 : index
    %41 = vector.load %arg3[%c0_13, %c0_14] : memref<8x256xf32, #tpu.memory_space<vmem>>, vector<4x256xf32>
    tpu.vector_store %arg3[%c0_13, %c0_14], %40 {strides = array<i32>} : memref<8x256xf32, #tpu.memory_space<vmem>>, vector<4x256xf32>,
    %c1 = arith.constant 1 : index
    %c0_15 = arith.constant 0 : index
    %c0_16 = arith.constant 0 : index
    %42 = vector.load %arg2[%c1, %c0_15, %c0_16] : memref<2x2x256xf32, #tpu.memory_space<vmem>>, vector<1x2x256xf32>
    %43 = vector.shape_cast %42 : vector<1x2x256xf32> to vector<2x256xf32>
    %c4 = arith.constant 4 : index
    %c0_17 = arith.constant 0 : index
    %44 = vector.load %arg1[%c4, %c0_17] : memref<8x256xf32, #tpu.memory_space<vmem>>, vector<4x256xf32>
    %45 = vector.extract_strided_slice %43 {offsets = [0, 0], sizes = [1, 256], strides = [1, 1]} : vector<2x256xf32> to vector<1x256xf32>
    %46 = vector.extract_strided_slice %43 {offsets = [1, 0], sizes = [1, 256], strides = [1, 1]} : vector<2x256xf32> to vector<1x256xf32>
    %cst_18 = arith.constant 1.000000e+00 : f32
    %47 = vector.broadcast %cst_18 : f32 to vector<1x256xf32>
    %48 = arith.addf %45, %47 : vector<1x256xf32>
    %cst_19 = arith.constant 5.000000e-01 : f32
    %49 = vector.broadcast %cst_19 : f32 to vector<1x256xf32>
    %50 = arith.mulf %48, %49 : vector<1x256xf32>
    %cst_20 = arith.constant 1.500000e+01 : f32
    %51 = vector.broadcast %cst_20 : f32 to vector<1x256xf32>
    %52 = arith.mulf %50, %51 : vector<1x256xf32>
    %cst_21 = arith.constant 0.000000e+00 : f32
    %c15_i32_22 = arith.constant 15 : i32
    %53 = vector.broadcast %cst_21 : f32 to vector<1x256xf32>
    %54 = arith.maximumf %53, %52 : vector<1x256xf32>
    %55 = arith.sitofp %c15_i32_22 : i32 to f32
    %56 = vector.broadcast %55 : f32 to vector<1x256xf32>
    %57 = arith.minimumf %56, %54 : vector<1x256xf32>
    %58 = math.roundeven %57 : vector<1x256xf32>
    %59 = arith.fptosi %58 : vector<1x256xf32> to vector<1x256xi32>
    %cst_23 = arith.constant 1.000000e+00 : f32
    %60 = vector.broadcast %cst_23 : f32 to vector<1x256xf32>
    %61 = arith.addf %46, %60 : vector<1x256xf32>
    %cst_24 = arith.constant 5.000000e-01 : f32
    %62 = vector.broadcast %cst_24 : f32 to vector<1x256xf32>
    %63 = arith.mulf %61, %62 : vector<1x256xf32>
    %cst_25 = arith.constant 1.500000e+01 : f32
    %64 = vector.broadcast %cst_25 : f32 to vector<1x256xf32>
    %65 = arith.mulf %63, %64 : vector<1x256xf32>
    %cst_26 = arith.constant 0.000000e+00 : f32
    %c15_i32_27 = arith.constant 15 : i32
    %66 = vector.broadcast %cst_26 : f32 to vector<1x256xf32>
    %67 = arith.maximumf %66, %65 : vector<1x256xf32>
    %68 = arith.sitofp %c15_i32_27 : i32 to f32
    %69 = vector.broadcast %68 : f32 to vector<1x256xf32>
    %70 = arith.minimumf %69, %67 : vector<1x256xf32>
    %71 = math.roundeven %70 : vector<1x256xf32>
    %72 = arith.fptosi %71 : vector<1x256xf32> to vector<1x256xi32>
    %c16_i32_28 = arith.constant 16 : i32
    %73 = vector.broadcast %c16_i32_28 : i32 to vector<1x256xi32>
    %74 = arith.muli %72, %73 : vector<1x256xi32>
    %75 = arith.addi %74, %59 : vector<1x256xi32>
    %76 = tpu.iota {dimensions = array<i32: 0>} : vector<256x1xi32>
    %77 = vector.broadcast %76 : vector<256x1xi32> to vector<256x256xi32>
    %78 = vector.broadcast %75 : vector<1x256xi32> to vector<256x256xi32>
    %79 = arith.cmpi eq, %77, %78 : vector<256x256xi32>
    %80 = arith.extui %79 : vector<256x256xi1> to vector<256x256xi32>
    %81 = arith.sitofp %80 : vector<256x256xi32> to vector<256x256xf32>
    %cst_29 = arith.constant dense<0.000000e+00> : vector<4x256xf32>
    %82 = tpu.matmul %44, %81, %cst_29 {dimension_numbers = #tpu.dot_dimension_numbers<[1], [0], [0], [1], [0, 0, 1, 1], [], []>} : vector<4x256xf32>, vector<256x256xf32>, vector<4x256xf32> -> vector<4x256xf32>
    %c4_30 = arith.constant 4 : index
    %c0_31 = arith.constant 0 : index
    %83 = vector.load %arg3[%c4_30, %c0_31] : memref<8x256xf32, #tpu.memory_space<vmem>>, vector<4x256xf32>
    tpu.vector_store %arg3[%c4_30, %c0_31], %82 {strides = array<i32>} : memref<8x256xf32, #tpu.memory_space<vmem>>, vector<4x256xf32>,
    return
  }
  func.func @transform_0(%arg0: i32) -> (i32, i32) {
    %c0_i32 = arith.constant 0 : i32
    %c0_i32_0 = arith.constant 0 : i32
    %c0_i32_1 = arith.constant 0 : i32
    return %c0_i32, %c0_i32_0 : i32, i32
  }
  func.func @transform_1(%arg0: i32) -> (i32, i32, i32) {
    %c0_i32 = arith.constant 0 : i32
    %c0_i32_0 = arith.constant 0 : i32
    %c0_i32_1 = arith.constant 0 : i32
    %c0_i32_2 = arith.constant 0 : i32
    return %c0_i32, %c0_i32_0, %c0_i32_1 : i32, i32, i32
  }
  func.func @transform_2(%arg0: i32) -> (i32, i32) {
    %c0_i32 = arith.constant 0 : i32
    %c0_i32_0 = arith.constant 0 : i32
    %c0_i32_1 = arith.constant 0 : i32
    return %c0_i32, %c0_i32_0 : i32, i32
  }
}

</mosaic_0001>

<bundles_post_ra>
// kernel: tpu_custom_call.1
= control target key start
LH: loop header
LB: loop body
LE: loop exit
PB: predicated region body
PF: predicated region fallthrough
CT: control target
= control target key end

     0   :  { %7 = vsyncpa [#allocation3], 0  ;;  %s1353_s0 = inlined_call_operand.hbm [shape: f32[8,256], index: 0, kind: input, shape index: {}]   ;;  %s1354_s1 = inlined_call_operand.hbm [shape: f32[2,2,256], index: 1, kind: input, shape index: {}]   ;;  %s1355_s2 = inlined_call_operand.hbm [shape: f32[8,256], index: 2, kind: output, shape index: {}]  }
   0x1   :  { %8 = vsyncpa [#allocation6], 0 }
   0x2   :  { %9 = vsyncpa [#allocation4], 0  ;;  %s1020_s9 = smov [#allocation2]   ;;  %s1021_s11 = smov [#allocation5]  }
   0x3   :  { %s16_s10 = sshll.u32 %s1020_s9, 4  ;;  %s25_s12 = sshll.u32 %s1021_s11, 4  ;;  %s17_s10 = int_to_ptr.vmem [resolvable:$true] %s16_s10  ;;  %s26_s12 = int_to_ptr.vmem [resolvable:$true] %s25_s12 }
   0x4   :  { %s962_s13 = scalar_lea.vmem %s17_s10, 256  ;;  %p967_p1 = scmp.lt.s32.totalorder %s17_s10, %s17_s10 }
   0x5   :  { %p963_p0 = scmp.ne.s32.totalorder %s17_s10, %s962_s13  ;;  %p968_p2 = scmp.lt.s32.totalorder %s962_s13, %s962_s13 }
   0x7   :  { %p969_p3 = por %p968_p2, %p967_p1 }
   0x9   :  { %p970_p4 = pnand %p969_p3, %p963_p0 }
   0xb   :  { %973 = shalt.err (!%p970_p4)
}
   0xc   :  { %19 = dma.hbm_to_vmem [thread:$0]  %s1353_s0, 256, %s17_s10, [#allocation3]  }
   0xd   :  { %s982_s16 = scalar_lea.vmem %s26_s12, 128  ;;  %p987_p6 = scmp.lt.s32.totalorder %s26_s12, %s26_s12 }
   0xe   :  { %p983_p5 = scmp.ne.s32.totalorder %s26_s12, %s982_s16  ;;  %p988_p7 = scmp.lt.s32.totalorder %s982_s16, %s982_s16 }
  0x10   :  { %p989_p8 = por %p988_p7, %p987_p6 }
  0x12   :  { %p990_p9 = pnand %p989_p8, %p983_p5 }
  0x14   :  { %993 = shalt.err (!%p990_p9)
}
  0x15   :  { %s1022_s17 = smov 64   ;;  %s1023_s18 = smov 4  }
  0x16   :  { %31 = dma.hbm_to_vmem [thread:$0]  %s1354_s1, 128, %s26_s12, [#allocation6], %s1022_s17, %s1022_s17, %s1023_s18  }
  0x17   :  { %1014 = dma.done.wait [#allocation3], 256  }
  0x18   :  { %1015 = vsyncadd [#allocation3], 4294967040 }
  0x19   :  { %1016 = dma.done.wait [#allocation6], 128  }
  0x1a   :  { %1017 = vsyncadd [#allocation6], 4294967168  ;;  %v38_v0 = vld [vmem:[#allocation5] sm:$0xf]  ;;  %v365_v1 = vld [vmem:[#allocation5 + $0x4] sm:$0xf]  ;;  %v50_v7 = vlaneseq }
  0x1b   :  { %v41_v2 = vadd.f32 1.0, %v38_v0  ;;  %v368_v3 = vadd.f32 1.0, %v365_v1  ;;  %v40_v4 = vld [vmem:[#allocation2 + $0x8] sm:$0xf]  ;;  %v367_v8 = vld [vmem:[#allocation2 + $0x8] sm:$0xf0] }
  0x1c   :  { %355 = vmatprep.mubr.f32.mxu0 %v40_v4  ;;  %v588_v13 = vrot.slane %v367_v8, 4  ;;  %v1047_v14 = vshrl.u32 %v50_v7, 7  ;;  %v1024_v39 = vmov 1.0   ;;  %s1025_s0 = smov [#allocation7]  }
  0x1d   :  { %v42_v5 = vmul.f32 0.5, %v41_v2  ;;  %v369_v6 = vmul.f32 0.5, %v368_v3  ;;  %v366_v3 = vld [vmem:[#allocation2] sm:$0xf0]  ;;  %s676_s1 = sshll.u32 %s1025_s0, 4  ;;  %s677_s1 = int_to_ptr.vmem [resolvable:$true] %s676_s1 }
  0x1e   :  { %655 = vmatprep.mubr.f32.mxu1 %v588_v13  ;;  %v85_v19 = vsub.s32 1, %v1047_v14  ;;  %v89_v20 = vsub.s32 3, %v1047_v14  ;;  %v66_v27 = vadd.s32 120, %v1047_v14  ;;  %v65_v32 = vadd.s32 112, %v1047_v14  ;;  %s994_s21 = scalar_lea.vmem %s677_s1, 256  ;;  %p999_p11 = scmp.lt.s32.totalorder %s677_s1, %s677_s1 }
  0x1f   :  { %v43_v9 = vmul.f32 15.0, %v42_v5  ;;  %v370_v10 = vmul.f32 15.0, %v369_v6  ;;  %v64_v33 = vadd.s32 104, %v1047_v14  ;;  %v63_v38 = vadd.s32 96, %v1047_v14  ;;  %v39_v5 = vld [vmem:[#allocation2] sm:$0xf]  ;;  %p995_p10 = scmp.ne.s32.totalorder %s677_s1, %s994_s21  ;;  %p1000_p12 = scmp.lt.s32.totalorder %s994_s21, %s994_s21 }
  0x20   :  { %v62_v40 = vadd.s32 88, %v1047_v14  ;;  %v61_v41 = vadd.s32 80, %v1047_v14  ;;  %v60_v42 = vadd.s32 72, %v1047_v14  ;;  %v59_v43 = vadd.s32 64, %v1047_v14 }
  0x21   :  { %v44_v11 = vmax.f32 %v43_v9, 0.0  ;;  %v371_v12 = vmax.f32 %v370_v10, 0.0  ;;  %v58_v44 = vadd.s32 56, %v1047_v14  ;;  %v57_v45 = vadd.s32 48, %v1047_v14  ;;  %p1001_p13 = por %p1000_p12, %p999_p11 }
  0x22   :  { %v56_v46 = vadd.s32 40, %v1047_v14  ;;  %v55_v47 = vadd.s32 32, %v1047_v14  ;;  %v54_v48 = vadd.s32 24, %v1047_v14  ;;  %v53_v49 = vadd.s32 16, %v1047_v14 }
  0x23   :  { %v45_v15 = vmin.f32 %v44_v11, 15.0  ;;  %v372_v16 = vmin.f32 %v371_v12, 15.0  ;;  %v52_v50 = vadd.s32 8, %v1047_v14  ;;  %v82_v51 = vadd.s32 248, %v1047_v14  ;;  %p1002_p0 = pnand %p1001_p13, %p995_p10 }
  0x24   :  { %v81_v52 = vadd.s32 240, %v1047_v14  ;;  %v80_v53 = vadd.s32 232, %v1047_v14  ;;  %v79_v54 = vadd.s32 224, %v1047_v14  ;;  %v78_v55 = vadd.s32 216, %v1047_v14 }
  0x25   :  { %v944_v17 = vcvt.f32.s32 %v45_v15  ;;  %v947_v18 = vcvt.f32.s32 %v372_v16  ;;  %v77_v56 = vadd.s32 208, %v1047_v14  ;;  %v76_v57 = vadd.s32 200, %v1047_v14 }
  0x26   :  { %v75_v58 = vadd.s32 192, %v1047_v14  ;;  %v74_v59 = vadd.s32 184, %v1047_v14  ;;  %v73_v60 = vadd.s32 176, %v1047_v14  ;;  %v72_v61 = vadd.s32 168, %v1047_v14 }
  0x27   :  { %v47_v21 = vmul.u32 16, %v944_v17  ;;  %v48_v22 = vrot.slane %v944_v17, 7  ;;  %v374_v23 = vmul.u32 16, %v947_v18  ;;  %v375_v24 = vrot.slane %v947_v18, 7 }
  0x28   :  { %v71_v62 = vadd.s32 160, %v1047_v14  ;;  %v70_v63 = vadd.s32 152, %v1047_v14  ;;  %v69_v0 = vadd.s32 144, %v1047_v14  ;;  %v68_v1 = vadd.s32 136, %v1047_v14 }
  0x29   :  { %v49_v25 = vadd.s32 %v48_v22, %v47_v21  ;;  %v376_v26 = vadd.s32 %v375_v24, %v374_v23  ;;  %v67_v2 = vadd.s32 128, %v1047_v14  ;;  %v587_v4 = vrot.slane %v366_v3, 4 }
  0x2b   :  { %v86_v28 = vrot.slane %v49_v25, %v85_v19  ;;  %v90_v29 = vrot.slane %v49_v25, %v89_v20  ;;  %v380_v30 = vrot.slane %v376_v26, %v85_v19  ;;  %v384_v31 = vrot.slane %v376_v26, %v89_v20 }
  0x2d   :  { %v1054_v34 = vrot.slane %v86_v28, %v85_v19  ;;  %v1056_v35 = vrot.slane %v90_v29, %v85_v19  ;;  %v1058_v36 = vrot.slane %v380_v30, %v85_v19  ;;  %v1060_v37 = vrot.slane %v384_v31, %v85_v19 }
  0x2f   :  { %vm130_vm0 = vcmp.eq.s32.totalorder %v66_v27, %v1056_v35  ;;  %vm424_vm1 = vcmp.eq.s32.totalorder %v66_v27, %v1060_v37  ;;  %vm129_vm2 = vcmp.eq.s32.totalorder %v66_v27, %v1054_v34  ;;  %vm423_vm3 = vcmp.eq.s32.totalorder %v66_v27, %v1058_v36 }
  0x30   :  { %750 = vmatprep.subr.msk.mxu0 %vm130_vm0, %v1024_v39  ;;  %878 = vmatprep.subr.msk.mxu1 %vm424_vm1, %v1024_v39  ;;  %vm128_vm4 = vcmp.eq.s32.totalorder %v65_v32, %v1056_v35  ;;  %vm422_vm5 = vcmp.eq.s32.totalorder %v65_v32, %v1060_v37  ;;  %vm127_vm6 = vcmp.eq.s32.totalorder %v65_v32, %v1054_v34 }
  0x31   :  { %751 = vmatpush1.msk.msra.mxu0 %vm129_vm2, %v1024_v39  ;;  %879 = vmatpush1.msk.msra.mxu1 %vm423_vm3, %v1024_v39  ;;  %vm421_vm7 = vcmp.eq.s32.totalorder %v65_v32, %v1058_v36  ;;  %vm126_vm8 = vcmp.eq.s32.totalorder %v64_v33, %v1056_v35  ;;  %vm420_vm9 = vcmp.eq.s32.totalorder %v64_v33, %v1060_v37 }
  0x32   :  { %752 = vmatprep.subr.msk.mxu0 %vm128_vm4, %v1024_v39  ;;  %880 = vmatprep.subr.msk.mxu1 %vm422_vm5, %v1024_v39  ;;  %vm125_vm10 = vcmp.eq.s32.totalorder %v64_v33, %v1054_v34  ;;  %vm419_vm11 = vcmp.eq.s32.totalorder %v64_v33, %v1058_v36  ;;  %vm124_vm12 = vcmp.eq.s32.totalorder %v63_v38, %v1056_v35 }
  0x33   :  { %753 = vmatpush1.msk.msra.mxu0 %vm127_vm6, %v1024_v39  ;;  %881 = vmatpush1.msk.msra.mxu1 %vm421_vm7, %v1024_v39  ;;  %vm418_vm13 = vcmp.eq.s32.totalorder %v63_v38, %v1060_v37  ;;  %vm123_vm14 = vcmp.eq.s32.totalorder %v63_v38, %v1054_v34  ;;  %vm417_vm15 = vcmp.eq.s32.totalorder %v63_v38, %v1058_v36 }
  0x34   :  { %754 = vmatprep.subr.msk.mxu0 %vm126_vm8, %v1024_v39  ;;  %882 = vmatprep.subr.msk.mxu1 %vm420_vm9, %v1024_v39  ;;  %vm122_vm0 = vcmp.eq.s32.totalorder %v62_v40, %v1056_v35  ;;  %vm416_vm1 = vcmp.eq.s32.totalorder %v62_v40, %v1060_v37  ;;  %vm121_vm2 = vcmp.eq.s32.totalorder %v62_v40, %v1054_v34 }
  0x35   :  { %755 = vmatpush1.msk.msra.mxu0 %vm125_vm10, %v1024_v39  ;;  %883 = vmatpush1.msk.msra.mxu1 %vm419_vm11, %v1024_v39  ;;  %vm415_vm3 = vcmp.eq.s32.totalorder %v62_v40, %v1058_v36  ;;  %vm120_vm4 = vcmp.eq.s32.totalorder %v61_v41, %v1056_v35  ;;  %vm414_vm5 = vcmp.eq.s32.totalorder %v61_v41, %v1060_v37 }
  0x36   :  { %756 = vmatprep.subr.msk.mxu0 %vm124_vm12, %v1024_v39  ;;  %884 = vmatprep.subr.msk.mxu1 %vm418_vm13, %v1024_v39  ;;  %vm119_vm6 = vcmp.eq.s32.totalorder %v61_v41, %v1054_v34  ;;  %vm413_vm7 = vcmp.eq.s32.totalorder %v61_v41, %v1058_v36  ;;  %vm118_vm8 = vcmp.eq.s32.totalorder %v60_v42, %v1056_v35 }
  0x37   :  { %757 = vmatpush1.msk.msra.mxu0 %vm123_vm14, %v1024_v39  ;;  %885 = vmatpush1.msk.msra.mxu1 %vm417_vm15, %v1024_v39  ;;  %vm412_vm9 = vcmp.eq.s32.totalorder %v60_v42, %v1060_v37  ;;  %vm117_vm10 = vcmp.eq.s32.totalorder %v60_v42, %v1054_v34  ;;  %vm411_vm11 = vcmp.eq.s32.totalorder %v60_v42, %v1058_v36 }
  0x38   :  { %758 = vmatprep.subr.msk.mxu0 %vm122_vm0, %v1024_v39  ;;  %886 = vmatprep.subr.msk.mxu1 %vm416_vm1, %v1024_v39  ;;  %vm116_vm12 = vcmp.eq.s32.totalorder %v59_v43, %v1056_v35  ;;  %vm410_vm13 = vcmp.eq.s32.totalorder %v59_v43, %v1060_v37  ;;  %vm115_vm14 = vcmp.eq.s32.totalorder %v59_v43, %v1054_v34 }
  0x39   :  { %759 = vmatpush1.msk.msra.mxu0 %vm121_vm2, %v1024_v39  ;;  %887 = vmatpush1.msk.msra.mxu1 %vm415_vm3, %v1024_v39  ;;  %vm409_vm15 = vcmp.eq.s32.totalorder %v59_v43, %v1058_v36  ;;  %vm114_vm0 = vcmp.eq.s32.totalorder %v58_v44, %v1056_v35  ;;  %vm408_vm1 = vcmp.eq.s32.totalorder %v58_v44, %v1060_v37 }
  0x3a   :  { %760 = vmatprep.subr.msk.mxu0 %vm120_vm4, %v1024_v39  ;;  %888 = vmatprep.subr.msk.mxu1 %vm414_vm5, %v1024_v39  ;;  %vm113_vm2 = vcmp.eq.s32.totalorder %v58_v44, %v1054_v34  ;;  %vm407_vm3 = vcmp.eq.s32.totalorder %v58_v44, %v1058_v36  ;;  %vm112_vm4 = vcmp.eq.s32.totalorder %v57_v45, %v1056_v35 }
  0x3b   :  { %761 = vmatpush1.msk.msra.mxu0 %vm119_vm6, %v1024_v39  ;;  %889 = vmatpush1.msk.msra.mxu1 %vm413_vm7, %v1024_v39  ;;  %vm406_vm5 = vcmp.eq.s32.totalorder %v57_v45, %v1060_v37  ;;  %vm111_vm6 = vcmp.eq.s32.totalorder %v57_v45, %v1054_v34  ;;  %vm405_vm7 = vcmp.eq.s32.totalorder %v57_v45, %v1058_v36 }
  0x3c   :  { %762 = vmatprep.subr.msk.mxu0 %vm118_vm8, %v1024_v39  ;;  %890 = vmatprep.subr.msk.mxu1 %vm412_vm9, %v1024_v39  ;;  %vm110_vm8 = vcmp.eq.s32.totalorder %v56_v46, %v1056_v35  ;;  %vm404_vm9 = vcmp.eq.s32.totalorder %v56_v46, %v1060_v37 }
  0x3d   :  { %763 = vmatpush1.msk.msra.mxu0 %vm117_vm10, %v1024_v39  ;;  %891 = vmatpush1.msk.msra.mxu1 %vm411_vm11, %v1024_v39  ;;  %vm109_vm10 = vcmp.eq.s32.totalorder %v56_v46, %v1054_v34  ;;  %vm403_vm11 = vcmp.eq.s32.totalorder %v56_v46, %v1058_v36 }
  0x3e   :  { %764 = vmatprep.subr.msk.mxu0 %vm116_vm12, %v1024_v39  ;;  %892 = vmatprep.subr.msk.mxu1 %vm410_vm13, %v1024_v39  ;;  %vm108_vm12 = vcmp.eq.s32.totalorder %v55_v47, %v1056_v35  ;;  %vm402_vm13 = vcmp.eq.s32.totalorder %v55_v47, %v1060_v37 }
  0x3f   :  { %765 = vmatpush1.msk.msra.mxu0 %vm115_vm14, %v1024_v39  ;;  %893 = vmatpush1.msk.msra.mxu1 %vm409_vm15, %v1024_v39  ;;  %vm107_vm14 = vcmp.eq.s32.totalorder %v55_v47, %v1054_v34  ;;  %vm401_vm15 = vcmp.eq.s32.totalorder %v55_v47, %v1058_v36 }
  0x40   :  { %766 = vmatprep.subr.msk.mxu0 %vm114_vm0, %v1024_v39  ;;  %894 = vmatprep.subr.msk.mxu1 %vm408_vm1, %v1024_v39  ;;  %vm106_vm0 = vcmp.eq.s32.totalorder %v54_v48, %v1056_v35  ;;  %vm400_vm1 = vcmp.eq.s32.totalorder %v54_v48, %v1060_v37 }
  0x41   :  { %767 = vmatpush1.msk.msra.mxu0 %vm113_vm2, %v1024_v39  ;;  %895 = vmatpush1.msk.msra.mxu1 %vm407_vm3, %v1024_v39  ;;  %vm105_vm2 = vcmp.eq.s32.totalorder %v54_v48, %v1054_v34  ;;  %vm399_vm3 = vcmp.eq.s32.totalorder %v54_v48, %v1058_v36 }
  0x42   :  { %768 = vmatprep.subr.msk.mxu0 %vm112_vm4, %v1024_v39  ;;  %896 = vmatprep.subr.msk.mxu1 %vm406_vm5, %v1024_v39  ;;  %vm104_vm4 = vcmp.eq.s32.totalorder %v53_v49, %v1056_v35  ;;  %vm398_vm5 = vcmp.eq.s32.totalorder %v53_v49, %v1060_v37 }
  0x43   :  { %769 = vmatpush1.msk.msra.mxu0 %vm111_vm6, %v1024_v39  ;;  %897 = vmatpush1.msk.msra.mxu1 %vm405_vm7, %v1024_v39  ;;  %vm103_vm6 = vcmp.eq.s32.totalorder %v53_v49, %v1054_v34  ;;  %vm397_vm7 = vcmp.eq.s32.totalorder %v53_v49, %v1058_v36 }
  0x44   :  { %770 = vmatprep.subr.msk.mxu0 %vm110_vm8, %v1024_v39  ;;  %898 = vmatprep.subr.msk.mxu1 %vm404_vm9, %v1024_v39  ;;  %vm102_vm8 = vcmp.eq.s32.totalorder %v52_v50, %v1056_v35  ;;  %vm396_vm9 = vcmp.eq.s32.totalorder %v52_v50, %v1060_v37 }
  0x45   :  { %771 = vmatpush1.msk.msra.mxu0 %vm109_vm10, %v1024_v39  ;;  %899 = vmatpush1.msk.msra.mxu1 %vm403_vm11, %v1024_v39  ;;  %vm101_vm10 = vcmp.eq.s32.totalorder %v52_v50, %v1054_v34  ;;  %vm395_vm11 = vcmp.eq.s32.totalorder %v52_v50, %v1058_v36 }
  0x46   :  { %772 = vmatprep.subr.msk.mxu0 %vm108_vm12, %v1024_v39  ;;  %900 = vmatprep.subr.msk.mxu1 %vm402_vm13, %v1024_v39  ;;  %vm100_vm12 = vcmp.eq.s32.totalorder %v1047_v14, %v1056_v35  ;;  %vm394_vm13 = vcmp.eq.s32.totalorder %v1047_v14, %v1060_v37 }
  0x47   :  { %773 = vmatpush1.msk.msra.mxu0 %vm107_vm14, %v1024_v39  ;;  %901 = vmatpush1.msk.msra.mxu1 %vm401_vm15, %v1024_v39  ;;  %vm99_vm14 = vcmp.eq.s32.totalorder %v1047_v14, %v1054_v34  ;;  %vm393_vm15 = vcmp.eq.s32.totalorder %v1047_v14, %v1058_v36 }
  0x48   :  { %774 = vmatprep.subr.msk.mxu0 %vm106_vm0, %v1024_v39  ;;  %902 = vmatprep.subr.msk.mxu1 %vm400_vm1, %v1024_v39  ;;  %vm162_vm0 = vcmp.eq.s32.totalorder %v82_v51, %v1056_v35  ;;  %vm456_vm1 = vcmp.eq.s32.totalorder %v82_v51, %v1060_v37 }
  0x49   :  { %775 = vmatpush1.msk.msra.mxu0 %vm105_vm2, %v1024_v39  ;;  %903 = vmatpush1.msk.msra.mxu1 %vm399_vm3, %v1024_v39  ;;  %vm161_vm2 = vcmp.eq.s32.totalorder %v82_v51, %v1054_v34  ;;  %vm455_vm3 = vcmp.eq.s32.totalorder %v82_v51, %v1058_v36 }
  0x4a   :  { %776 = vmatprep.subr.msk.mxu0 %vm104_vm4, %v1024_v39  ;;  %904 = vmatprep.subr.msk.mxu1 %vm398_vm5, %v1024_v39  ;;  %vm160_vm4 = vcmp.eq.s32.totalorder %v81_v52, %v1056_v35  ;;  %vm454_vm5 = vcmp.eq.s32.totalorder %v81_v52, %v1060_v37 }
  0x4b   :  { %777 = vmatpush1.msk.msra.mxu0 %vm103_vm6, %v1024_v39  ;;  %905 = vmatpush1.msk.msra.mxu1 %vm397_vm7, %v1024_v39  ;;  %vm159_vm6 = vcmp.eq.s32.totalorder %v81_v52, %v1054_v34  ;;  %vm453_vm7 = vcmp.eq.s32.totalorder %v81_v52, %v1058_v36 }
  0x4c   :  { %778 = vmatprep.subr.msk.mxu0 %vm102_vm8, %v1024_v39  ;;  %906 = vmatprep.subr.msk.mxu1 %vm396_vm9, %v1024_v39  ;;  %vm158_vm8 = vcmp.eq.s32.totalorder %v80_v53, %v1056_v35  ;;  %vm452_vm9 = vcmp.eq.s32.totalorder %v80_v53, %v1060_v37 }
  0x4d   :  { %779 = vmatpush1.msk.msra.mxu0 %vm101_vm10, %v1024_v39  ;;  %907 = vmatpush1.msk.msra.mxu1 %vm395_vm11, %v1024_v39  ;;  %vm157_vm10 = vcmp.eq.s32.totalorder %v80_v53, %v1054_v34  ;;  %vm451_vm11 = vcmp.eq.s32.totalorder %v80_v53, %v1058_v36 }
  0x4e   :  { %780 = vmatprep.subr.msk.mxu0 %vm100_vm12, %v1024_v39  ;;  %908 = vmatprep.subr.msk.mxu1 %vm394_vm13, %v1024_v39  ;;  %vm156_vm12 = vcmp.eq.s32.totalorder %v79_v54, %v1056_v35  ;;  %vm450_vm13 = vcmp.eq.s32.totalorder %v79_v54, %v1060_v37 }
  0x4f   :  { %781 = vmatpush1.msk.msra.mxu0 %vm99_vm14, %v1024_v39  ;;  %909 = vmatpush1.msk.msra.mxu1 %vm393_vm15, %v1024_v39  ;;  %vm155_vm14 = vcmp.eq.s32.totalorder %v79_v54, %v1054_v34  ;;  %vm449_vm15 = vcmp.eq.s32.totalorder %v79_v54, %v1058_v36 }
  0x50   :  { %782 = vmatprep.subr.msk.mxu0 %vm162_vm0, %v1024_v39  ;;  %910 = vmatprep.subr.msk.mxu1 %vm456_vm1, %v1024_v39  ;;  %vm154_vm0 = vcmp.eq.s32.totalorder %v78_v55, %v1056_v35  ;;  %vm448_vm1 = vcmp.eq.s32.totalorder %v78_v55, %v1060_v37 }
  0x51   :  { %783 = vmatpush2.msk.msra.mxu0 %vm161_vm2, %v1024_v39  ;;  %911 = vmatpush2.msk.msra.mxu1 %vm455_vm3, %v1024_v39  ;;  %vm153_vm2 = vcmp.eq.s32.totalorder %v78_v55, %v1054_v34  ;;  %vm447_vm3 = vcmp.eq.s32.totalorder %v78_v55, %v1058_v36 }
  0x52   :  { %784 = vmatprep.subr.msk.mxu0 %vm160_vm4, %v1024_v39  ;;  %912 = vmatprep.subr.msk.mxu1 %vm454_vm5, %v1024_v39  ;;  %vm152_vm4 = vcmp.eq.s32.totalorder %v77_v56, %v1056_v35  ;;  %vm446_vm5 = vcmp.eq.s32.totalorder %v77_v56, %v1060_v37 }
  0x53   :  { %785 = vmatpush2.msk.msra.mxu0 %vm159_vm6, %v1024_v39  ;;  %913 = vmatpush2.msk.msra.mxu1 %vm453_vm7, %v1024_v39  ;;  %vm151_vm6 = vcmp.eq.s32.totalorder %v77_v56, %v1054_v34  ;;  %vm445_vm7 = vcmp.eq.s32.totalorder %v77_v56, %v1058_v36 }
  0x54   :  { %786 = vmatprep.subr.msk.mxu0 %vm158_vm8, %v1024_v39  ;;  %914 = vmatprep.subr.msk.mxu1 %vm452_vm9, %v1024_v39  ;;  %vm150_vm8 = vcmp.eq.s32.totalorder %v76_v57, %v1056_v35  ;;  %vm444_vm9 = vcmp.eq.s32.totalorder %v76_v57, %v1060_v37 }
  0x55   :  { %787 = vmatpush2.msk.msra.mxu0 %vm157_vm10, %v1024_v39  ;;  %915 = vmatpush2.msk.msra.mxu1 %vm451_vm11, %v1024_v39  ;;  %vm149_vm10 = vcmp.eq.s32.totalorder %v76_v57, %v1054_v34  ;;  %vm443_vm11 = vcmp.eq.s32.totalorder %v76_v57, %v1058_v36 }
  0x56   :  { %788 = vmatprep.subr.msk.mxu0 %vm156_vm12, %v1024_v39  ;;  %916 = vmatprep.subr.msk.mxu1 %vm450_vm13, %v1024_v39  ;;  %vm148_vm12 = vcmp.eq.s32.totalorder %v75_v58, %v1056_v35  ;;  %vm442_vm13 = vcmp.eq.s32.totalorder %v75_v58, %v1060_v37 }
  0x57   :  { %789 = vmatpush2.msk.msra.mxu0 %vm155_vm14, %v1024_v39  ;;  %917 = vmatpush2.msk.msra.mxu1 %vm449_vm15, %v1024_v39  ;;  %vm147_vm14 = vcmp.eq.s32.totalorder %v75_v58, %v1054_v34  ;;  %vm441_vm15 = vcmp.eq.s32.totalorder %v75_v58, %v1058_v36 }
  0x58   :  { %790 = vmatprep.subr.msk.mxu0 %vm154_vm0, %v1024_v39  ;;  %918 = vmatprep.subr.msk.mxu1 %vm448_vm1, %v1024_v39  ;;  %vm146_vm0 = vcmp.eq.s32.totalorder %v74_v59, %v1056_v35  ;;  %vm440_vm1 = vcmp.eq.s32.totalorder %v74_v59, %v1060_v37 }
  0x59   :  { %791 = vmatpush2.msk.msra.mxu0 %vm153_vm2, %v1024_v39  ;;  %919 = vmatpush2.msk.msra.mxu1 %vm447_vm3, %v1024_v39  ;;  %vm145_vm2 = vcmp.eq.s32.totalorder %v74_v59, %v1054_v34  ;;  %vm439_vm3 = vcmp.eq.s32.totalorder %v74_v59, %v1058_v36 }
  0x5a   :  { %792 = vmatprep.subr.msk.mxu0 %vm152_vm4, %v1024_v39  ;;  %920 = vmatprep.subr.msk.mxu1 %vm446_vm5, %v1024_v39  ;;  %vm144_vm4 = vcmp.eq.s32.totalorder %v73_v60, %v1056_v35  ;;  %vm438_vm5 = vcmp.eq.s32.totalorder %v73_v60, %v1060_v37 }
  0x5b   :  { %793 = vmatpush2.msk.msra.mxu0 %vm151_vm6, %v1024_v39  ;;  %921 = vmatpush2.msk.msra.mxu1 %vm445_vm7, %v1024_v39  ;;  %vm143_vm6 = vcmp.eq.s32.totalorder %v73_v60, %v1054_v34  ;;  %vm437_vm7 = vcmp.eq.s32.totalorder %v73_v60, %v1058_v36 }
  0x5c   :  { %794 = vmatprep.subr.msk.mxu0 %vm150_vm8, %v1024_v39  ;;  %922 = vmatprep.subr.msk.mxu1 %vm444_vm9, %v1024_v39  ;;  %vm142_vm8 = vcmp.eq.s32.totalorder %v72_v61, %v1056_v35  ;;  %vm436_vm9 = vcmp.eq.s32.totalorder %v72_v61, %v1060_v37 }
  0x5d   :  { %795 = vmatpush2.msk.msra.mxu0 %vm149_vm10, %v1024_v39  ;;  %923 = vmatpush2.msk.msra.mxu1 %vm443_vm11, %v1024_v39  ;;  %vm141_vm10 = vcmp.eq.s32.totalorder %v72_v61, %v1054_v34  ;;  %vm435_vm11 = vcmp.eq.s32.totalorder %v72_v61, %v1058_v36 }
  0x5e   :  { %796 = vmatprep.subr.msk.mxu0 %vm148_vm12, %v1024_v39  ;;  %924 = vmatprep.subr.msk.mxu1 %vm442_vm13, %v1024_v39  ;;  %vm140_vm12 = vcmp.eq.s32.totalorder %v71_v62, %v1056_v35  ;;  %vm434_vm13 = vcmp.eq.s32.totalorder %v71_v62, %v1060_v37 }
  0x5f   :  { %797 = vmatpush2.msk.msra.mxu0 %vm147_vm14, %v1024_v39  ;;  %925 = vmatpush2.msk.msra.mxu1 %vm441_vm15, %v1024_v39  ;;  %vm139_vm14 = vcmp.eq.s32.totalorder %v71_v62, %v1054_v34  ;;  %vm433_vm15 = vcmp.eq.s32.totalorder %v71_v62, %v1058_v36 }
  0x60   :  { %798 = vmatprep.subr.msk.mxu0 %vm146_vm0, %v1024_v39  ;;  %926 = vmatprep.subr.msk.mxu1 %vm440_vm1, %v1024_v39  ;;  %vm138_vm0 = vcmp.eq.s32.totalorder %v70_v63, %v1056_v35  ;;  %vm432_vm1 = vcmp.eq.s32.totalorder %v70_v63, %v1060_v37 }
  0x61   :  { %799 = vmatpush2.msk.msra.mxu0 %vm145_vm2, %v1024_v39  ;;  %927 = vmatpush2.msk.msra.mxu1 %vm439_vm3, %v1024_v39  ;;  %vm137_vm2 = vcmp.eq.s32.totalorder %v70_v63, %v1054_v34  ;;  %vm431_vm3 = vcmp.eq.s32.totalorder %v70_v63, %v1058_v36 }
  0x62   :  { %800 = vmatprep.subr.msk.mxu0 %vm144_vm4, %v1024_v39  ;;  %928 = vmatprep.subr.msk.mxu1 %vm438_vm5, %v1024_v39  ;;  %vm136_vm4 = vcmp.eq.s32.totalorder %v69_v0, %v1056_v35  ;;  %vm430_vm5 = vcmp.eq.s32.totalorder %v69_v0, %v1060_v37 }
  0x63   :  { %801 = vmatpush2.msk.msra.mxu0 %vm143_vm6, %v1024_v39  ;;  %929 = vmatpush2.msk.msra.mxu1 %vm437_vm7, %v1024_v39  ;;  %vm135_vm6 = vcmp.eq.s32.totalorder %v69_v0, %v1054_v34  ;;  %vm429_vm7 = vcmp.eq.s32.totalorder %v69_v0, %v1058_v36 }
  0x64   :  { %802 = vmatprep.subr.msk.mxu0 %vm142_vm8, %v1024_v39  ;;  %930 = vmatprep.subr.msk.mxu1 %vm436_vm9, %v1024_v39  ;;  %vm134_vm8 = vcmp.eq.s32.totalorder %v68_v1, %v1056_v35  ;;  %vm428_vm9 = vcmp.eq.s32.totalorder %v68_v1, %v1060_v37 }
  0x65   :  { %803 = vmatpush2.msk.msra.mxu0 %vm141_vm10, %v1024_v39  ;;  %931 = vmatpush2.msk.msra.mxu1 %vm435_vm11, %v1024_v39  ;;  %vm133_vm10 = vcmp.eq.s32.totalorder %v68_v1, %v1054_v34  ;;  %vm427_vm11 = vcmp.eq.s32.totalorder %v68_v1, %v1058_v36 }
  0x66   :  { %804 = vmatprep.subr.msk.mxu0 %vm140_vm12, %v1024_v39  ;;  %932 = vmatprep.subr.msk.mxu1 %vm434_vm13, %v1024_v39  ;;  %vm132_vm12 = vcmp.eq.s32.totalorder %v67_v2, %v1056_v35  ;;  %vm426_vm13 = vcmp.eq.s32.totalorder %v67_v2, %v1060_v37 }
  0x67   :  { %805 = vmatpush2.msk.msra.mxu0 %vm139_vm14, %v1024_v39  ;;  %933 = vmatpush2.msk.msra.mxu1 %vm433_vm15, %v1024_v39  ;;  %vm131_vm14 = vcmp.eq.s32.totalorder %v67_v2, %v1054_v34  ;;  %vm425_vm15 = vcmp.eq.s32.totalorder %v67_v2, %v1058_v36 }
  0x68   :  { %806 = vmatprep.subr.msk.mxu0 %vm138_vm0, %v1024_v39  ;;  %934 = vmatprep.subr.msk.mxu1 %vm432_vm1, %v1024_v39 }
  0x69   :  { %807 = vmatpush2.msk.msra.mxu0 %vm137_vm2, %v1024_v39  ;;  %935 = vmatpush2.msk.msra.mxu1 %vm431_vm3, %v1024_v39 }
  0x6a   :  { %808 = vmatprep.subr.msk.mxu0 %vm136_vm4, %v1024_v39  ;;  %936 = vmatprep.subr.msk.mxu1 %vm430_vm5, %v1024_v39 }
  0x6b   :  { %809 = vmatpush2.msk.msra.mxu0 %vm135_vm6, %v1024_v39  ;;  %937 = vmatpush2.msk.msra.mxu1 %vm429_vm7, %v1024_v39 }
  0x6c   :  { %810 = vmatprep.subr.msk.mxu0 %vm134_vm8, %v1024_v39  ;;  %938 = vmatprep.subr.msk.mxu1 %vm428_vm9, %v1024_v39 }
  0x6d   :  { %811 = vmatpush2.msk.msra.mxu0 %vm133_vm10, %v1024_v39  ;;  %939 = vmatpush2.msk.msra.mxu1 %vm427_vm11, %v1024_v39 }
  0x6e   :  { %812 = vmatprep.subr.msk.mxu0 %vm132_vm12, %v1024_v39  ;;  %940 = vmatprep.subr.msk.mxu1 %vm426_vm13, %v1024_v39 }
  0x6f   :  { %813 = vmatpush2.msk.msra.mxu0 %vm131_vm14, %v1024_v39  ;;  %941 = vmatpush2.msk.msra.mxu1 %vm425_vm15, %v1024_v39 }
  0x70   :  { %356 = vmatmul.mubr.f32.vlgmr.msra.gmra.mxu0 %v39_v5  ;;  %656 = vmatmul.mubr.f32.vlgmr.msra.gmra.mxu1 %v587_v4 }
 0x130   :  { %v357_v6 = vpop.f32.mrf.mxu0  ;;  %v657_v7 = vpop.f32.mrf.mxu1 }
 0x131   :  { %362 = vst [vmem:[#allocation7] sm:$0xf] %v357_v6  ;;  %v664_v8 = vrot.slane %v657_v7, 4 }
 0x132   :  { %v359_v9 = vpop.f32.mrf.mxu0  ;;  %v659_v10 = vpop.f32.mrf.mxu1 }
 0x133   :  { %668 = vst [vmem:[#allocation7] sm:$0xf0] %v664_v8  ;;  %363 = vst [vmem:[#allocation7 + $0x8] sm:$0xf] %v359_v9  ;;  %v665_v11 = vrot.slane %v659_v10, 4 }
 0x135   :  { %669 = vst [vmem:[#allocation7 + $0x8] sm:$0xf0] %v665_v11 }
 0x136   :  { %1005 = shalt.err (!%p1002_p0)
}
 0x137   :  { %679 = dma.vmem_to_hbm [thread:$0]  %s677_s1, 256, %s1355_s2, [#allocation4]  }
 0x138   :  { %1018 = dma.done.wait [#allocation4], 256  }
 0x139   :  { %1019 = vsyncadd [#allocation4], 4294967040 }
 0x13a   :  { %683 = vsyncpa [#allocation3], 1 }
 0x13b   :  { %684 = vsyncpa [#allocation6], 1 }
 0x13c   :  { %685 = vsyncpa [#allocation4], 1 }

</bundles_post_ra>
